<compile_context>
chip_gen: v5e
topology: v5e:2x2
jax: 0.10.0
libtpu: 0.0.40
codegen_flags: <defaults>
</compile_context>

<pallas_src>
import functools

import numpy as np

import jax
import jax.numpy as jnp
from jax.experimental import pallas as pl
from jax.experimental.pallas import tpu as pltpu

EPS = 1e-5
NEG_SLOPE = 0.2


@functools.lru_cache(maxsize=1)
def _roll_mode():
    """Probe pltpu.roll once (bf16 lane roll) and return its sign convention.

    Returns +1 if pltpu.roll matches jnp.roll (out[k] = x[(k - shift) % n]),
    -1 if it rotates the opposite way, 0 if it is unusable for this
    shape/dtype (then the kernel falls back to compiler-relayout windows).
    """
    try:
        def probe(x_ref, o_ref):
            o_ref[...] = pltpu.roll(x_ref[...], 1, axis=1)

        lanes = 128
        base_i = jnp.arange(lanes, dtype=jnp.int32).astype(jnp.bfloat16)
        x = jnp.tile(base_i[None, :], (16, 1))
        y = pl.pallas_call(
            probe,
            out_shape=jax.ShapeDtypeStruct((16, lanes), jnp.bfloat16))(x)
        row = np.asarray(jax.block_until_ready(y)).astype(np.float32)[0]
        base = np.arange(lanes, dtype=np.float32)
        if np.array_equal(row, np.roll(base, 1)):
            return 1
        if np.array_equal(row, np.roll(base, -1)):
            return -1
    except Exception:
        pass
    return 0


def _conv_down_kernel(ph_ref, w_ref, o_ref, patch_ref, *,
                      batch_tile, c_in, bq, oh, ow, qlen, lp, roll_sign):
    """One grid step = `batch_tile` images.

    ph_ref:    (batch_tile, 4*c_in, LS)     bf16  phase-decomposed padded input
    w_ref:     (OC, 16*c_in)                bf16  weight (offset-grp, phase, chan)
    o_ref:     (batch_tile, OC, lp)         f32   output (channel, flat-spatial)
    patch_ref: (16*c_in, batch_tile*lp)     bf16  VMEM scratch patch tile
    """
    rows = 4 * c_in
    offs = (0, 1, bq, bq + 1)          # lane offset of each offset-group

    # ---- patch assembly: 4 full-tile (rows x lp) bf16 stores per image ----
    for b in range(batch_tile):        # tiny static unroll (batch_tile small)
        slab = ph_ref[b, :, 0:lp] if roll_sign != 0 else None
        for g, off in enumerate(offs):
            if roll_sign != 0:
                # Lane rotate on the XLU slot; wrapped columns only land in
                # positions that are masked out of the stats and cropped.
                win = slab if off == 0 else pltpu.roll(
                    slab, (-off * roll_sign) % lp, axis=1)
            else:
                win = ph_ref[b, :, off:off + lp]   # compiler-relayout window
            patch_ref[g * rows:(g + 1) * rows, b * lp:(b + 1) * lp] = win

    # ---- conv: one MXU matmul for the whole tile, f32 accumulation ----
    y = jnp.dot(w_ref[...], patch_ref[...],
                preferred_element_type=jnp.float32)   # (OC, batch_tile*lp)

    # ---- validity mask of the flattened phase layout (iota, no operand) ----
    # float div/floor keeps everything exact for these magnitudes and avoids
    # vector integer div/mod.
    q = jax.lax.broadcasted_iota(jnp.int32, (1, lp), 1).astype(jnp.float32)
    row_idx = jnp.floor(q / float(bq))
    col_idx = q - row_idx * float(bq)
    mask = ((q < float(qlen)) & (row_idx < float(oh))
            & (col_idx < float(ow))).astype(jnp.float32)      # (1, lp)
    inv_count = 1.0 / float(oh * ow)

    # ---- per-image InstanceNorm2d (biased var) + LeakyReLU(0.2) ----
    for b in range(batch_tile):
        yb = y[:, b * lp:(b + 1) * lp]                 # 128-aligned lane slice
        mean = jnp.sum(yb * mask, axis=-1, keepdims=True) * inv_count
        cent = (yb - mean) * mask
        var = jnp.sum(cent * cent, axis=-1, keepdims=True) * inv_count
        yn = cent * jax.lax.rsqrt(var + EPS)           # garbage cols -> 0
        o_ref[b] = jnp.maximum(yn, NEG_SLOPE * yn).astype(o_ref.dtype)


@functools.partial(
    jax.jit, static_argnames=("stride", "padding", "batch_tile", "roll_sign"))
def _conv_down_impl(x, weight, *, stride, padding, batch_tile, roll_sign):
    n, c, h, w = x.shape
    oc, c2, kh, kw = weight.shape
    assert c2 == c
    # Kernel is specialized to the module's instantiation (k=3, s=2).
    assert stride == 2 and kh == 3 and kw == 3, "specialized to kernel=3, stride=2"

    hp, wp = h + 2 * padding, w + 2 * padding
    assert hp % 2 == 0 and wp % 2 == 0
    oh = (hp - kh) // stride + 1
    ow = (wp - kw) // stride + 1
    aq, bq = hp // 2, wp // 2          # phase-plane spatial dims
    qlen = aq * bq                     # flattened phase width (valid + garbage)
    # lane-dense working width; big enough that circular rolls only wrap into
    # columns that are never valid outputs (masked + cropped).
    lp = ((qlen + bq + 1 + 127) // 128) * 128
    ls = lp if roll_sign != 0 else lp + 128    # fallback windows need slack
    assert n % batch_tile == 0

    # --- phase decomposition (+ bf16 cast fused in) of the padded input ---
    xpad = jnp.pad(x, ((0, 0), (0, 0), (padding, padding), (padding, padding)))
    ph = xpad.reshape(n, c, aq, 2, bq, 2).transpose(0, 3, 5, 1, 2, 4)
    ph = ph.reshape(n, 4 * c, qlen).astype(jnp.bfloat16)
    ph = jnp.pad(ph, ((0, 0), (0, 0), (0, ls - qlen)))         # (N, 4C, LS)

    # --- weight as (OC, 16*C): 4 offset-groups x 4 phases x C, zero-padded ---
    taps = []
    for g in range(4):
        gi, gj = g // 2, g % 2
        for p in range(4):
            pi, pj = p // 2, p % 2
            i, j = 2 * gi + pi, 2 * gj + pj
            if i < kh and j < kw:
                taps.append(weight[:, :, i, j])                # (OC, C)
            else:
                taps.append(jnp.zeros((oc, c), weight.dtype))
    wmat = jnp.stack(taps, axis=1).reshape(oc, 16 * c).astype(jnp.bfloat16)

    kernel = functools.partial(
        _conv_down_kernel, batch_tile=batch_tile, c_in=c, bq=bq, oh=oh, ow=ow,
        qlen=qlen, lp=lp, roll_sign=roll_sign)

    out_wide = pl.pallas_call(
        kernel,
        out_shape=jax.ShapeDtypeStruct((n, oc, lp), jnp.float32),
        grid_spec=pltpu.PrefetchScalarGridSpec(
            num_scalar_prefetch=0,
            grid=(n // batch_tile,),
            in_specs=[
                pl.BlockSpec((batch_tile, 4 * c, ls), lambda g: (g, 0, 0)),
                # loop-invariant weight: constant index_map, tiny & resident
                pl.BlockSpec((oc, 16 * c), lambda g: (0, 0)),
            ],
            out_specs=pl.BlockSpec((batch_tile, oc, lp), lambda g: (g, 0, 0)),
            scratch_shapes=[
                pltpu.VMEM((16 * c, batch_tile * lp), jnp.bfloat16)],
        ),
        compiler_params=pltpu.CompilerParams(
            dimension_semantics=("parallel",),
            # Blocks here are a few tens of KiB; 32 MiB is safe on every
            # generation (v7x scoped default is 32 MiB of its 64 MiB VMEM).
            vmem_limit_bytes=32 * 1024 * 1024),
    )(ph, wmat)

    # lane-dense (OC, P_flat) -> NCHW is a cheap crop + reshape (no transpose)
    out = out_wide[:, :, :qlen].reshape(n, oc, aq, bq)[:, :, :oh, :ow]
    return out


def _pick_batch_tile(n):
    # >=2 grid steps (prefer 4) for pipelining and v7x megacore sharding,
    # while keeping tiles as large as possible to amortise per-step overhead.
    for steps in (4, 2):
        if n >= steps and n % steps == 0:
            return n // steps
    return 1


def conv_down_forward(x, weight, *, stride=2, padding=1, batch_tile=None):
    """x: (N, C, H, W) f32; weight: (OC, C, KH, KW) f32 (PyTorch OIHW)."""
    if batch_tile is None:
        batch_tile = _pick_batch_tile(x.shape[0])
    return _conv_down_impl(x, weight, stride=stride, padding=padding,
                           batch_tile=batch_tile, roll_sign=_roll_mode())


def _reference_forward(x, weight, *, stride=2, padding=1):
    """Pure-JAX f32 reference (conv -> instance norm -> leaky relu)."""
    y = jax.lax.conv_general_dilated(
        x, weight, window_strides=(stride, stride),
        padding=[(padding, padding), (padding, padding)],
        dimension_numbers=("NCHW", "OIHW", "NCHW"),
        precision=jax.lax.Precision.HIGHEST)
    mean = jnp.mean(y, axis=(2, 3), keepdims=True)
    var = jnp.mean((y - mean) ** 2, axis=(2, 3), keepdims=True)
    yn = (y - mean) * jax.lax.rsqrt(var + EPS)
    return jnp.where(yn > 0, yn, NEG_SLOPE * yn)


if __name__ == "__main__":
    key = jax.random.PRNGKey(0)
    kx, kwt = jax.random.split(key)

    N, C, H, W = 2, 4, 16, 16
    OC, KH, KW = 8, 3, 3      # out channels = nf_mult(=2) * in_c(=4) = 8

    x = jax.random.normal(kx, (N, C, H, W), dtype=jnp.float32)
    weight = jax.random.normal(kwt, (OC, C, KH, KW), dtype=jnp.float32) * 0.1

    out = conv_down_forward(x, weight, stride=2, padding=1)
    out = jax.block_until_ready(out)
    assert out.shape == (N, OC, H // 2, W // 2), out.shape

    # Kernel multiplies in bf16 with f32 accumulation; compare against an f32
    # reference evaluated on identically bf16-rounded operands so the check
    # is tight (remaining diff is f32 accumulation order only).
    xb = x.astype(jnp.bfloat16).astype(jnp.float32)
    wb = weight.astype(jnp.bfloat16).astype(jnp.float32)
    ref = _reference_forward(xb, wb, stride=2, padding=1)
    err = float(jnp.max(jnp.abs(out - ref)))
    assert err < 2e-3, f"mismatch vs reference: max abs err {err}"

    print("KERNEL_OK")
</pallas_src>

<mosaic_0001>
module attributes {stable_mosaic.version = 11 : i64} {
  func.func @probe(%arg0: memref<16x128xbf16, #tpu.memory_space<vmem>>, %arg1: memref<16x128xbf16, #tpu.memory_space<vmem>>) attributes {dimension_semantics = [], scalar_prefetch = 0 : i64, scratch_operands = 0 : i64, tpu.core_type = #tpu.core_type<tc>} {
    %c0 = arith.constant 0 : index
    %c0_0 = arith.constant 0 : index
    %0 = vector.load %arg0[%c0, %c0_0] : memref<16x128xbf16, #tpu.memory_space<vmem>>, vector<16x128xbf16>
    %c1_i32 = arith.constant 1 : i32
    %1 = tpu.dynamic_rotate %0 by %c1_i32 dim 1 : vector<16x128xbf16>, i32 -> vector<16x128xbf16>
    %c0_1 = arith.constant 0 : index
    %c0_2 = arith.constant 0 : index
    %2 = vector.load %arg1[%c0_1, %c0_2] : memref<16x128xbf16, #tpu.memory_space<vmem>>, vector<16x128xbf16>
    tpu.vector_store %arg1[%c0_1, %c0_2], %1 {strides = array<i32>} : memref<16x128xbf16, #tpu.memory_space<vmem>>, vector<16x128xbf16>,
    return
  }
}

module attributes {stable_mosaic.version = 11 : i64} {
  func.func @_conv_down_kernel(%arg0: i32, %arg1: memref<1x16x256xbf16, #tpu.memory_space<vmem>>, %arg2: memref<8x64xbf16, #tpu.memory_space<vmem>>, %arg3: memref<1x8x128xf32, #tpu.memory_space<vmem>>, %arg4: memref<64x128xbf16, #tpu.memory_space<vmem>>) attributes {dimension_semantics = [#tpu.dimension_semantics<parallel>], iteration_bounds = array<i64: 2>, scalar_prefetch = 0 : i64, scratch_operands = 1 : i64, tpu.core_type = #tpu.core_type<tc>, window_params = [{transform_indices = @transform_0, window_bounds = array<i64: 1, 16, 256>}, {pipeline_mode = #tpu.pipeline_mode<synchronous>, transform_indices = @transform_1, window_bounds = array<i64: 8, 64>}, {transform_indices = @transform_2, window_bounds = array<i64: 1, 8, 128>}]} {
    %c0 = arith.constant 0 : index
    %c0_0 = arith.constant 0 : index
    %c0_1 = arith.constant 0 : index
    %0 = vector.load %arg1[%c0, %c0_0, %c0_1] : memref<1x16x256xbf16, #tpu.memory_space<vmem>>, vector<1x16x128xbf16>
    %1 = vector.shape_cast %0 : vector<1x16x128xbf16> to vector<16x128xbf16>
    %c0_2 = arith.constant 0 : index
    %c0_3 = arith.constant 0 : index
    %2 = vector.load %arg4[%c0_2, %c0_3] : memref<64x128xbf16, #tpu.memory_space<vmem>>, vector<16x128xbf16>
    tpu.vector_store %arg4[%c0_2, %c0_3], %1 {strides = array<i32>} : memref<64x128xbf16, #tpu.memory_space<vmem>>, vector<16x128xbf16>,
    %c0_4 = arith.constant 0 : index
    %c0_5 = arith.constant 0 : index
    %c1 = arith.constant 1 : index
    %3 = vector.load %arg1[%c0_4, %c0_5, %c1] : memref<1x16x256xbf16, #tpu.memory_space<vmem>>, vector<1x16x128xbf16>
    %4 = vector.shape_cast %3 : vector<1x16x128xbf16> to vector<16x128xbf16>
    %c16 = arith.constant 16 : index
    %c0_6 = arith.constant 0 : index
    %5 = vector.load %arg4[%c16, %c0_6] : memref<64x128xbf16, #tpu.memory_space<vmem>>, vector<16x128xbf16>
    tpu.vector_store %arg4[%c16, %c0_6], %4 {strides = array<i32>} : memref<64x128xbf16, #tpu.memory_space<vmem>>, vector<16x128xbf16>,
    %c0_7 = arith.constant 0 : index
    %c0_8 = arith.constant 0 : index
    %c9 = arith.constant 9 : index
    %6 = vector.load %arg1[%c0_7, %c0_8, %c9] : memref<1x16x256xbf16, #tpu.memory_space<vmem>>, vector<1x16x128xbf16>
    %7 = vector.shape_cast %6 : vector<1x16x128xbf16> to vector<16x128xbf16>
    %c32 = arith.constant 32 : index
    %c0_9 = arith.constant 0 : index
    %8 = vector.load %arg4[%c32, %c0_9] : memref<64x128xbf16, #tpu.memory_space<vmem>>, vector<16x128xbf16>
    tpu.vector_store %arg4[%c32, %c0_9], %7 {strides = array<i32>} : memref<64x128xbf16, #tpu.memory_space<vmem>>, vector<16x128xbf16>,
    %c0_10 = arith.constant 0 : index
    %c0_11 = arith.constant 0 : index
    %c10 = arith.constant 10 : index
    %9 = vector.load %arg1[%c0_10, %c0_11, %c10] : memref<1x16x256xbf16, #tpu.memory_space<vmem>>, vector<1x16x128xbf16>
    %10 = vector.shape_cast %9 : vector<1x16x128xbf16> to vector<16x128xbf16>
    %c48 = arith.constant 48 : index
    %c0_12 = arith.constant 0 : index
    %11 = vector.load %arg4[%c48, %c0_12] : memref<64x128xbf16, #tpu.memory_space<vmem>>, vector<16x128xbf16>
    tpu.vector_store %arg4[%c48, %c0_12], %10 {strides = array<i32>} : memref<64x128xbf16, #tpu.memory_space<vmem>>, vector<16x128xbf16>,
    %c0_13 = arith.constant 0 : index
    %c0_14 = arith.constant 0 : index
    %12 = vector.load %arg2[%c0_13, %c0_14] : memref<8x64xbf16, #tpu.memory_space<vmem>>, vector<8x64xbf16>
    %c0_15 = arith.constant 0 : index
    %c0_16 = arith.constant 0 : index
    %13 = vector.load %arg4[%c0_15, %c0_16] : memref<64x128xbf16, #tpu.memory_space<vmem>>, vector<64x128xbf16>
    %cst = arith.constant dense<0.000000e+00> : vector<8x128xf32>
    %14 = tpu.matmul %12, %13, %cst {dimension_numbers = #tpu.dot_dimension_numbers<[1], [0], [0], [1], [0, 0, 1, 1], [], []>} : vector<8x64xbf16>, vector<64x128xbf16>, vector<8x128xf32> -> vector<8x128xf32>
    %15 = tpu.iota {dimensions = array<i32: 1>} : vector<1x128xi32>
    %16 = arith.sitofp %15 : vector<1x128xi32> to vector<1x128xf32>
    %cst_17 = arith.constant 9.000000e+00 : f32
    %17 = vector.broadcast %cst_17 : f32 to vector<1x128xf32>
    %18 = arith.divf %16, %17 : vector<1x128xf32>
    %19 = math.floor %18 : vector<1x128xf32>
    %cst_18 = arith.constant 9.000000e+00 : f32
    %20 = vector.broadcast %cst_18 : f32 to vector<1x128xf32>
    %21 = arith.mulf %19, %20 : vector<1x128xf32>
    %22 = arith.subf %16, %21 : vector<1x128xf32>
    %cst_19 = arith.constant 8.100000e+01 : f32
    %23 = vector.broadcast %cst_19 : f32 to vector<1x128xf32>
    %24 = arith.cmpf olt, %16, %23 : vector<1x128xf32>
    %cst_20 = arith.constant 8.000000e+00 : f32
    %25 = vector.broadcast %cst_20 : f32 to vector<1x128xf32>
    %26 = arith.cmpf olt, %19, %25 : vector<1x128xf32>
    %27 = arith.andi %24, %26 : vector<1x128xi1>
    %cst_21 = arith.constant 8.000000e+00 : f32
    %28 = vector.broadcast %cst_21 : f32 to vector<1x128xf32>
    %29 = arith.cmpf olt, %22, %28 : vector<1x128xf32>
    %30 = arith.andi %27, %29 : vector<1x128xi1>
    %31 = arith.extui %30 : vector<1x128xi1> to vector<1x128xi32>
    %32 = arith.sitofp %31 : vector<1x128xi32> to vector<1x128xf32>
    %33 = vector.broadcast %32 : vector<1x128xf32> to vector<8x128xf32>
    %34 = arith.mulf %14, %33 : vector<8x128xf32>
    %cst_22 = arith.constant dense<0.000000e+00> : vector<8xf32>
    %35 = vector.multi_reduction <add>, %34, %cst_22 [1] : vector<8x128xf32> to vector<8xf32>
    %36 = vector.shape_cast %35 : vector<8xf32> to vector<8x1xf32>
    %cst_23 = arith.constant 1.562500e-02 : f32
    %37 = vector.broadcast %cst_23 : f32 to vector<8x1xf32>
    %38 = arith.mulf %36, %37 : vector<8x1xf32>
    %39 = vector.broadcast %38 : vector<8x1xf32> to vector<8x128xf32>
    %40 = arith.subf %14, %39 : vector<8x128xf32>
    %41 = vector.broadcast %32 : vector<1x128xf32> to vector<8x128xf32>
    %42 = arith.mulf %40, %41 : vector<8x128xf32>
    %43 = arith.mulf %42, %42 : vector<8x128xf32>
    %cst_24 = arith.constant dense<0.000000e+00> : vector<8xf32>
    %44 = vector.multi_reduction <add>, %43, %cst_24 [1] : vector<8x128xf32> to vector<8xf32>
    %45 = vector.shape_cast %44 : vector<8xf32> to vector<8x1xf32>
    %cst_25 = arith.constant 1.562500e-02 : f32
    %46 = vector.broadcast %cst_25 : f32 to vector<8x1xf32>
    %47 = arith.mulf %45, %46 : vector<8x1xf32>
    %cst_26 = arith.constant 9.99999974E-6 : f32
    %48 = vector.broadcast %cst_26 : f32 to vector<8x1xf32>
    %49 = arith.addf %47, %48 : vector<8x1xf32>
    %50 = math.rsqrt %49 : vector<8x1xf32>
    %51 = vector.broadcast %50 : vector<8x1xf32> to vector<8x128xf32>
    %52 = arith.mulf %42, %51 : vector<8x128xf32>
    %cst_27 = arith.constant 2.000000e-01 : f32
    %53 = vector.broadcast %cst_27 : f32 to vector<8x128xf32>
    %54 = arith.mulf %53, %52 : vector<8x128xf32>
    %55 = arith.maximumf %52, %54 : vector<8x128xf32>
    %c0_28 = arith.constant 0 : index
    %c0_29 = arith.constant 0 : index
    %c0_30 = arith.constant 0 : index
    %56 = vector.load %arg3[%c0_28, %c0_29, %c0_30] : memref<1x8x128xf32, #tpu.memory_space<vmem>>, vector<1x8x128xf32>
    %57 = vector.shape_cast %56 : vector<1x8x128xf32> to vector<8x128xf32>
    %58 = vector.shape_cast %55 : vector<8x128xf32> to vector<1x8x128xf32>
    tpu.vector_store %arg3[%c0_28, %c0_29, %c0_30], %58 {strides = array<i32>} : memref<1x8x128xf32, #tpu.memory_space<vmem>>, vector<1x8x128xf32>,
    return
  }
  func.func @transform_0(%arg0: i32) -> (i32, i32, i32) {
    %c0_i32 = arith.constant 0 : i32
    %c0_i32_0 = arith.constant 0 : i32
    %c0_i32_1 = arith.constant 0 : i32
    return %arg0, %c0_i32, %c0_i32_0 : i32, i32, i32
  }
  func.func @transform_1(%arg0: i32) -> (i32, i32) {
    %c0_i32 = arith.constant 0 : i32
    %c0_i32_0 = arith.constant 0 : i32
    %c0_i32_1 = arith.constant 0 : i32
    return %c0_i32, %c0_i32_0 : i32, i32
  }
  func.func @transform_2(%arg0: i32) -> (i32, i32, i32) {
    %c0_i32 = arith.constant 0 : i32
    %c0_i32_0 = arith.constant 0 : i32
    %c0_i32_1 = arith.constant 0 : i32
    return %arg0, %c0_i32, %c0_i32_0 : i32, i32, i32
  }
}

</mosaic_0001>

<bundles_post_ra>
// kernel: _conv_down_impl.1
= control target key start
LH: loop header
LB: loop body
LE: loop exit
PB: predicated region body
PF: predicated region fallthrough
CT: control target
= control target key end

     0   :  { %s425_s9 = smov 0   ;;  %s449_s0 = inlined_call_operand.vmem [shape: bf16[2,16,256], index: 0, kind: input, shape index: {}]   ;;  %s450_s1 = inlined_call_operand.vmem [shape: bf16[8,64], index: 1, kind: input, shape index: {}]   ;;  %s451_s2 = inlined_call_operand.vmem [shape: f32[2,8,128], index: 2, kind: output, shape index: {}]  }
   0x1 LB: > { %s347_s10 = sadd.s32 4294967295, %s403_s9   ;;  %p351_p0 = scmp.ge.s32.totalorder %s403_s9, 1  ;;  %s403_s9 = sphi %s425_s9, %s12_s9  }
   0x2   : > { %p112_p1 = scmp.lt.s32.totalorder %s403_s9, 3 }
   0x4   : > { %p113_p2 = pnand %p351_p0, %p112_p1 }
   0x5   : > { %p133_p3 = scmp.lt.s32.totalorder (!%p113_p2), %s347_s10, 1  ;;  %s405_s15 = smov (!%p113_p2), 118  }
   0x6   : > { %116 = sbr.rel (%p113_p2) target bundleno = 561 (0x231), region = 28  ;;  %s406_s16 = smov (!%p113_p2), 119  }
   0x7   : > { %s407_s17 = smov (!%p113_p2), 127  }
   0xb   : > { %s453_s10 = smov (!%p133_p3, %s347_s10), 1  ;;  %vm157_vm0 = vcmask 1039360   ;;  %vm191_vm1 = vcmask 965632   ;;  %vm174_vm2 = vcmask 973824   ;;  %v198_v26 = vld [vmem:[%s450_s1] sm:$0xf]  ;;  %v248_v31 = vlaneseq }
   0xc   : > { %s375_s11 = sshll.u32 %s453_s10, 4  ;;  %vm231_vm3 = vcmask 523264   ;;  %v408_v27 = vmov 9.0   ;;  %v409_v41 = vmov 0.0   ;;  %s354_s20 = sshll.u32 %s453_s10, 3 }
   0xd   : > { %s137_s14 = scalar_lea.vmem %s449_s0, %s375_s11  ;;  %393 = vrcp.f32 %v408_v27  ;;  %v249_v33 = vand.u32 127, %v248_v31  ;;  %s141_s23 = scalar_lea.vmem %s451_s2, %s354_s20 }
   0xe   : > { %v181_v0 = vld [vmem:[%s137_s14] sm:$0xff]  ;;  %v144_v2 = vld [vmem:[%s137_s14 + $0x8] sm:$0xf] }
   0xf   : > { %v143_v1 = vld [vmem:[%s137_s14] sm:$0xf]  ;;  %185 = vrot.lane.b32.xlu0 %v181_v0, %s405_s15  ;;  %168 = vrot.lane.b32.xlu1 %v181_v0, %s406_s16  ;;  %146 = vst [vmem:[#allocation2 + $0x4] sm:$0xf] %v144_v2  ;;  %v182_v3 = vld [vmem:[%s137_s14 + $0x8] sm:$0xff]  ;;  %v250_v35 = vcvt.s32.f32 %v249_v33 }
  0x10   : > { %145 = vst [vmem:[#allocation2] sm:$0xf] %v143_v1  ;;  %151 = vrot.lane.b32.xlu2 %v181_v0, %s407_s17 }
  0x11   : > { %vm262_vm5 = vcmp.lt.f32.partialorder %v250_v35, 81.0 }
  0x13   : > { %v394_v28 = vpop.eup %393 }
  0x14   : > { %v252_v29 = vmul.f32 9.0, %v394_v28  ;;  %vm256_vm4 = vweird.f32 %v394_v28 }
  0x16   : > { %v253_v30 = vsub.f32 1.0, %v252_v29 }
  0x17   : > { %187 = vrot.lane.b32.xlu0 %v182_v3, %s405_s15  ;;  %170 = vrot.lane.b32.xlu1 %v182_v3, %s406_s16  ;;  %v376_v25 = vld [vmem:[#allocation2] sm:$0xff] }
  0x18   : > { %153 = vrot.lane.b32.xlu2 %v182_v3, %s407_s17  ;;  %v254_v32 = vmul.f32 %v394_v28, %v253_v30 }
  0x1a   : > { %v255_v34 = vadd.f32 %v394_v28, %v254_v32 }
  0x1c   : > { %v257_v36 = vsel %vm256_vm4, %v394_v28, %v255_v34 }
  0x1d   : > { %v258_v37 = vmul.f32 %v257_v36, %v250_v35 }
  0x1f   : > { %v259_v38 = vfloor.f32 %v258_v37 }
  0x21   : > { %v260_v39 = vmul.f32 9.0, %v259_v38  ;;  %vm263_vm6 = vcmp.lt.f32.partialorder %v259_v38, 8.0 }
  0x22   : > { %vm264_vm7 = vmand %vm262_vm5, %vm263_vm6 }
  0x23   : > { %v261_v40 = vsub.f32 %v250_v35, %v260_v39 }
  0x25   : > { %vm265_vm8 = vcmp.lt.f32.partialorder %v261_v40, 8.0 }
  0x26   : > { %vm266_vm9 = vmand %vm264_vm7, %vm265_vm8 }
  0x27   : > { %v372_v42 = vsel %vm266_vm9, 1.0, %v409_v41 }
  0x6a   : > { %v152_v4 = vpop.permute.xlu2 %151 }
  0x6b   : > { %v155_v5 = vrot.slane %v152_v4, 4 }
  0x6d   : > { %v158_v6 = vsel %vm157_vm0, %v152_v4, %v155_v5 }
  0x6e   : > { %162 = vst [vmem:[#allocation2 + $0x8] sm:$0xf] %v158_v6 }
  0x72   : > { %v154_v7 = vpop.permute.xlu2 %153 }
  0x73   : > { %v156_v8 = vrot.slane %v154_v7, 4 }
  0x75   : > { %v159_v9 = vsel %vm157_vm0, %v154_v7, %v156_v8 }
  0x76   : > { %163 = vst [vmem:[#allocation2 + $0xc] sm:$0xf] %v159_v9 }
  0x7d   : > { %v377_v24 = vld [vmem:[#allocation2 + $0x8] sm:$0xff] }
  0x81   : > { %v186_v10 = vpop.permute.xlu0 %185  ;;  %v169_v11 = vpop.permute.xlu1 %168 }
  0x82   : > { %v189_v12 = vrot.slane %v186_v10, 4  ;;  %v172_v13 = vrot.slane %v169_v11, 4 }
  0x84   : > { %v192_v14 = vsel %vm191_vm1, %v186_v10, %v189_v12  ;;  %v175_v15 = vsel %vm174_vm2, %v169_v11, %v172_v13 }
  0x85   : > { %196 = vst [vmem:[#allocation2 + $0x18] sm:$0xf] %v192_v14 }
  0x86   : > { %179 = vst [vmem:[#allocation2 + $0x10] sm:$0xf] %v175_v15 }
  0x89   : > { %v188_v16 = vpop.permute.xlu0 %187  ;;  %v171_v17 = vpop.permute.xlu1 %170 }
  0x8a   : > { %v190_v18 = vrot.slane %v188_v16, 4  ;;  %v173_v19 = vrot.slane %v171_v17, 4 }
  0x8c   : > { %v193_v20 = vsel %vm191_vm1, %v188_v16, %v190_v18  ;;  %v176_v21 = vsel %vm174_vm2, %v171_v17, %v173_v19 }
  0x8d   : > { %197 = vst [vmem:[#allocation2 + $0x1c] sm:$0xf] %v193_v20 }
  0x8e   : > { %180 = vst [vmem:[#allocation2 + $0x14] sm:$0xf] %v176_v21 }
  0x94   : > { %v379_v22 = vld [vmem:[#allocation2 + $0x18] sm:$0xff] }
  0x95   : > { %239 = vmatpush.bf16.msra.mxu0 %v379_v22  ;;  %v378_v23 = vld [vmem:[#allocation2 + $0x10] sm:$0xff] }
  0x99   : > { %240 = vmatpush.bf16.msra.mxu0 %v378_v23 }
  0x9d   : > { %241 = vmatpush.bf16.msra.mxu0 %v377_v24 }
  0xa1   : > { %242 = vmatpush.bf16.msra.mxu0 %v376_v25 }
  0xa4   : > { %371 = vmatmul.msk.bf16.vlgmr.msra.gmra.mxu0 %vm231_vm3, %v198_v26 }
 0x121   : > { %v244_v43 = vpop.f32.mrf.mxu0 }
 0x122   : > { %v269_v44 = vmul.f32 %v372_v42, %v244_v43 }
 0x124   : > { %270 = vadd.xlane.f32.xlu0 %v269_v44 }
 0x129   : > { %v246_v45 = vpop.f32.mrf.mxu0 }
 0x197   : > { %v271_v46 = vpop.xlane.xlu0 %270 }
 0x198   : > { %v272_v47 = vmul.f32 0.015625, %v271_v46 }
 0x19a   : > { %v273_v48 = vsub.f32 %v244_v43, %v272_v47 }
 0x19c   : > { %v274_v49 = vmul.f32 %v372_v42, %v273_v48 }
 0x19e   : > { %v275_v50 = vmul.f32 %v274_v49, %v274_v49 }
 0x1a0   : > { %276 = vadd.xlane.f32.xlu1 %v275_v50 }
 0x213   : > { %v277_v51 = vpop.xlane.xlu1 %276 }
 0x214   : > { %v278_v52 = vmul.f32 0.015625, %v277_v51 }
 0x216   : > { %v279_v53 = vadd.f32 1e-05, %v278_v52 }
 0x218   : > { %395 = vrsqrt.f32 %v279_v53  ;;  %vm286_vm11 = vweird.f32 %v279_v53 }
 0x21e   : > { %v396_v54 = vpop.eup %395 }
 0x21f   : > { %v281_v55 = vmul.f32 %v396_v54, %v279_v53  ;;  %vm287_vm10 = vweird.f32 %v396_v54 }
 0x220   : > { %vm288_vm12 = vmor %vm286_vm11, %vm287_vm10 }
 0x221   : > { %v282_v56 = vmul.f32 %v396_v54, %v281_v55 }
 0x223   : > { %v283_v57 = vmul.f32 0.5, %v282_v56 }
 0x225   : > { %v284_v58 = vsub.f32 1.5, %v283_v57 }
 0x227   : > { %v285_v59 = vmul.f32 %v396_v54, %v284_v58 }
 0x229   : > { %v289_v60 = vsel %vm288_vm12, %v396_v54, %v285_v59 }
 0x22a   : > { %v290_v61 = vmul.f32 %v289_v60, %v274_v49 }
 0x22c   : > { %v291_v62 = vmul.f32 0.2, %v290_v61 }
 0x22e   : > { %v292_v63 = vmax.f32 %v290_v61, %v291_v62 }
 0x230   : > { %293 = vst [vmem:[%s141_s23] sm:$0xff] %v292_v63 }
 0x231 PF: > { %s12_s9 = sadd.s32 1, %s403_s9  }
 0x232   : > { %p9_p4 = scmp.ge.s32.totalorder %s12_s9, 4  }
 0x234   :  { %11 = sbr.rel (!%p9_p4) target bundleno = 1 (0x1), region = 58 }

</bundles_post_ra>
